<compile_context>
chip_gen: v6e
topology: v6e:2x2x1
jax: 0.10.0
libtpu: 0.0.40
codegen_flags: <defaults>
</compile_context>

<pallas_src>
import functools

import jax
import jax.numpy as jnp
from jax.experimental import pallas as pl
from jax.experimental.pallas import tpu as pltpu

LANE = 128          # TPU lane width; output layer is lane-padded *in-kernel only*
NEG_INF = -1e30     # bias value for padded softmax lanes -> exp() underflows to 0


def _round_up(x, m):
    return (x + m - 1) // m * m


def _policy_mlp_kernel(x_ref, w1_ref, b1_ref, w2_ref, b2_ref, w3_ref, b3_ref, o_ref,
                       *, action_dim):
    # Matmul operands in bf16 (MXU-native), f32 accumulate.
    x = x_ref[...].astype(jnp.bfloat16)
    # Layer 1: Linear + ReLU
    h = jnp.dot(x, w1_ref[...], preferred_element_type=jnp.float32)
    h = jnp.maximum(h + b1_ref[...], 0.0)
    # Layer 2: Linear + ReLU
    h = jnp.dot(h.astype(jnp.bfloat16), w2_ref[...], preferred_element_type=jnp.float32)
    h = jnp.maximum(h + b2_ref[...], 0.0)
    # Output layer: Linear (lane-padded columns carry -1e30 bias -> exp()==0).
    logits = jnp.dot(h.astype(jnp.bfloat16), w3_ref[...],
                     preferred_element_type=jnp.float32) + b3_ref[...]
    # Numerically stable softmax along the last axis; padded lanes contribute 0.
    m = jnp.max(logits, axis=-1, keepdims=True)
    e = jnp.exp(logits - m)
    denom = jnp.sum(e, axis=-1, keepdims=True)
    probs = e / denom                      # exact divide: rows sum to 1 for sampling
    # Store only the real action columns (keeps HBM writes 16x smaller than the
    # in-register 128-lane pad).
    o_ref[...] = probs[:, :action_dim].astype(o_ref.dtype)


def prepare_policy_params(w1, b1, w2, b2, w3, b3):
    """One-time (per policy-update) prep kept OUT of the per-step forward path:
    bf16 weight casts and 128-lane pad of the output layer (zero weights,
    -1e30 bias so padded softmax lanes are exactly 0)."""
    action_dim = w3.shape[1]
    out_dim = _round_up(max(action_dim, LANE), LANE)
    pad_cols = out_dim - action_dim
    w3p = jnp.pad(w3, ((0, 0), (0, pad_cols))).astype(jnp.bfloat16)
    b3p = jnp.pad(b3, ((0, 0), (0, pad_cols)), constant_values=NEG_INF)
    return (w1.astype(jnp.bfloat16), b1,
            w2.astype(jnp.bfloat16), b2,
            w3p, b3p, action_dim)


def _choose_tile(batch, tile_b):
    tb = min(tile_b, _round_up(batch, 8))
    # v7x megacore: prefer >=2 grid steps so both TensorCores get work
    # (harmless on single-TC v5e/v6e); only worth splitting past one vreg row.
    if batch > 8 and pl.cdiv(batch, tb) < 2:
        tb = _round_up(pl.cdiv(batch, 2), 8)
    return tb


@functools.partial(jax.jit, static_argnames=("action_dim", "tile_b"))
def policy_network_forward(x, w1b, b1, w2b, b2, w3p, b3p, *, action_dim, tile_b=2048):
    """Fused forward pass of PolicyNetwork (hidden_layers of length 2).

    Expects params already run through prepare_policy_params()."""
    batch, state_dim = x.shape
    h1 = w1b.shape[1]
    h2 = w2b.shape[1]
    out_dim = w3p.shape[1]        # lane-padded width (in-kernel only)

    tb = _choose_tile(batch, tile_b)
    grid = (pl.cdiv(batch, tb),)

    def resident(shape):
        # Same block every grid step -> stays resident in VMEM (no re-DMA).
        return pl.BlockSpec(shape, lambda i: (0, 0))

    kernel = functools.partial(_policy_mlp_kernel, action_dim=action_dim)

    return pl.pallas_call(
        kernel,
        out_shape=jax.ShapeDtypeStruct((batch, action_dim), jnp.float32),
        grid=grid,
        in_specs=[
            pl.BlockSpec((tb, state_dim), lambda i: (i, 0)),   # x: tiled over batch
            resident((state_dim, h1)),
            resident((1, h1)),
            resident((h1, h2)),
            resident((1, h2)),
            resident((h2, out_dim)),
            resident((1, out_dim)),
        ],
        out_specs=pl.BlockSpec((tb, action_dim), lambda i: (i, 0)),
        compiler_params=pltpu.CompilerParams(
            dimension_semantics=("parallel",),   # v7x: shard batch tiles across TCs
        ),
    )(x, w1b, b1, w2b, b2, w3p, b3p)


def init_params(key, state_dim, hidden_layers, action_dim):
    """Deterministic init mimicking torch.nn.Linear default (uniform +-1/sqrt(fan_in))."""
    dims = [state_dim] + list(hidden_layers) + [action_dim]
    params = []
    for i in range(len(dims) - 1):
        fan_in, fan_out = dims[i], dims[i + 1]
        key, kw, kb = jax.random.split(key, 3)
        bound = 1.0 / jnp.sqrt(jnp.float32(fan_in))
        w = jax.random.uniform(kw, (fan_in, fan_out), jnp.float32, -bound, bound)
        b = jax.random.uniform(kb, (1, fan_out), jnp.float32, -bound, bound)
        params.append((w, b))
    return params


def reference_forward_f32(x, params):
    h = x
    for w, b in params[:-1]:
        h = jnp.maximum(h @ w + b, 0.0)
    w, b = params[-1]
    return jax.nn.softmax(h @ w + b, axis=-1)


def reference_forward_bf16(x, params):
    """Reference using the same bf16-operand / f32-accumulate matmul recipe."""
    h = x
    for w, b in params[:-1]:
        h = jnp.maximum(
            jnp.dot(h.astype(jnp.bfloat16), w.astype(jnp.bfloat16),
                    preferred_element_type=jnp.float32) + b, 0.0)
    w, b = params[-1]
    logits = jnp.dot(h.astype(jnp.bfloat16), w.astype(jnp.bfloat16),
                     preferred_element_type=jnp.float32) + b
    return jax.nn.softmax(logits, axis=-1)


if __name__ == "__main__":
    state_dim = 16
    hidden_layers = [32, 32]
    action_dim = 8

    key = jax.random.PRNGKey(0)
    params = init_params(key, state_dim, hidden_layers, action_dim)
    (w1, b1), (w2, b2), (w3, b3) = params

    # One-time weight prep (done at policy-update time, not per forward call).
    w1b, b1p, w2b, b2p, w3p, b3p, adim = prepare_policy_params(w1, b1, w2, b2, w3, b3)

    # --- tiny RL-style batch ------------------------------------------------
    key, kx = jax.random.split(key)
    x_small = jax.random.normal(kx, (4, state_dim), dtype=jnp.float32)
    out_small = jax.block_until_ready(
        policy_network_forward(x_small, w1b, b1p, w2b, b2p, w3p, b3p, action_dim=adim))
    assert out_small.shape == (4, action_dim)
    # Exact division: probabilities sum to 1 to f32 precision.
    assert jnp.allclose(jnp.sum(out_small, axis=-1), 1.0, atol=1e-5)
    # Matches a bf16-operand reference tightly ...
    assert jnp.allclose(out_small, reference_forward_bf16(x_small, params),
                        atol=1e-3, rtol=1e-3)
    # ... and the full-f32 reference within bf16 rounding.
    assert jnp.allclose(out_small, reference_forward_f32(x_small, params),
                        atol=3e-2, rtol=3e-2)

    # --- larger batch: exercises >1 grid step and a partial boundary tile ----
    key, kx2 = jax.random.split(key)
    x_big = jax.random.normal(kx2, (200, state_dim), dtype=jnp.float32)
    out_big = jax.block_until_ready(
        policy_network_forward(x_big, w1b, b1p, w2b, b2p, w3p, b3p, action_dim=adim))
    assert out_big.shape == (200, action_dim)
    assert jnp.allclose(jnp.sum(out_big, axis=-1), 1.0, atol=1e-5)
    assert jnp.allclose(out_big, reference_forward_bf16(x_big, params),
                        atol=1e-3, rtol=1e-3)

    print("KERNEL_OK")
</pallas_src>

<mosaic_0001>
module attributes {stable_mosaic.version = 11 : i64} {
  func.func @_policy_mlp_kernel(%arg0: i32, %arg1: memref<8x16xf32, #tpu.memory_space<vmem>>, %arg2: memref<16x32xbf16, #tpu.memory_space<vmem>>, %arg3: memref<1x32xf32, #tpu.memory_space<vmem>>, %arg4: memref<32x32xbf16, #tpu.memory_space<vmem>>, %arg5: memref<1x32xf32, #tpu.memory_space<vmem>>, %arg6: memref<32x128xbf16, #tpu.memory_space<vmem>>, %arg7: memref<1x128xf32, #tpu.memory_space<vmem>>, %arg8: memref<8x8xf32, #tpu.memory_space<vmem>>) attributes {dimension_semantics = [#tpu.dimension_semantics<parallel>], iteration_bounds = array<i64: 1>, scalar_prefetch = 0 : i64, scratch_operands = 0 : i64, tpu.core_type = #tpu.core_type<tc>, window_params = [{transform_indices = @transform_0, window_bounds = array<i64: 8, 16>}, {pipeline_mode = #tpu.pipeline_mode<synchronous>, transform_indices = @transform_1, window_bounds = array<i64: 16, 32>}, {pipeline_mode = #tpu.pipeline_mode<synchronous>, transform_indices = @transform_2, window_bounds = array<i64: 1, 32>}, {pipeline_mode = #tpu.pipeline_mode<synchronous>, transform_indices = @transform_3, window_bounds = array<i64: 32, 32>}, {pipeline_mode = #tpu.pipeline_mode<synchronous>, transform_indices = @transform_4, window_bounds = array<i64: 1, 32>}, {pipeline_mode = #tpu.pipeline_mode<synchronous>, transform_indices = @transform_5, window_bounds = array<i64: 32, 128>}, {pipeline_mode = #tpu.pipeline_mode<synchronous>, transform_indices = @transform_6, window_bounds = array<i64: 1, 128>}, {transform_indices = @transform_7, window_bounds = array<i64: 8, 8>}]} {
    %c0 = arith.constant 0 : index
    %c0_0 = arith.constant 0 : index
    %0 = vector.load %arg1[%c0, %c0_0] : memref<8x16xf32, #tpu.memory_space<vmem>>, vector<8x16xf32>
    %1 = arith.truncf %0 : vector<8x16xf32> to vector<8x16xbf16>
    %c0_1 = arith.constant 0 : index
    %c0_2 = arith.constant 0 : index
    %2 = vector.load %arg2[%c0_1, %c0_2] : memref<16x32xbf16, #tpu.memory_space<vmem>>, vector<16x32xbf16>
    %cst = arith.constant dense<0.000000e+00> : vector<8x32xf32>
    %3 = tpu.matmul %1, %2, %cst {dimension_numbers = #tpu.dot_dimension_numbers<[1], [0], [0], [1], [0, 0, 1, 1], [], []>} : vector<8x16xbf16>, vector<16x32xbf16>, vector<8x32xf32> -> vector<8x32xf32>
    %c0_3 = arith.constant 0 : index
    %c0_4 = arith.constant 0 : index
    %4 = vector.load %arg3[%c0_3, %c0_4] : memref<1x32xf32, #tpu.memory_space<vmem>>, vector<1x32xf32>
    %5 = vector.broadcast %4 : vector<1x32xf32> to vector<8x32xf32>
    %6 = arith.addf %3, %5 : vector<8x32xf32>
    %cst_5 = arith.constant 0.000000e+00 : f32
    %7 = vector.broadcast %cst_5 : f32 to vector<8x32xf32>
    %8 = arith.maximumf %6, %7 : vector<8x32xf32>
    %9 = arith.truncf %8 : vector<8x32xf32> to vector<8x32xbf16>
    %c0_6 = arith.constant 0 : index
    %c0_7 = arith.constant 0 : index
    %10 = vector.load %arg4[%c0_6, %c0_7] : memref<32x32xbf16, #tpu.memory_space<vmem>>, vector<32x32xbf16>
    %cst_8 = arith.constant dense<0.000000e+00> : vector<8x32xf32>
    %11 = tpu.matmul %9, %10, %cst_8 {dimension_numbers = #tpu.dot_dimension_numbers<[1], [0], [0], [1], [0, 0, 1, 1], [], []>} : vector<8x32xbf16>, vector<32x32xbf16>, vector<8x32xf32> -> vector<8x32xf32>
    %c0_9 = arith.constant 0 : index
    %c0_10 = arith.constant 0 : index
    %12 = vector.load %arg5[%c0_9, %c0_10] : memref<1x32xf32, #tpu.memory_space<vmem>>, vector<1x32xf32>
    %13 = vector.broadcast %12 : vector<1x32xf32> to vector<8x32xf32>
    %14 = arith.addf %11, %13 : vector<8x32xf32>
    %cst_11 = arith.constant 0.000000e+00 : f32
    %15 = vector.broadcast %cst_11 : f32 to vector<8x32xf32>
    %16 = arith.maximumf %14, %15 : vector<8x32xf32>
    %17 = arith.truncf %16 : vector<8x32xf32> to vector<8x32xbf16>
    %c0_12 = arith.constant 0 : index
    %c0_13 = arith.constant 0 : index
    %18 = vector.load %arg6[%c0_12, %c0_13] : memref<32x128xbf16, #tpu.memory_space<vmem>>, vector<32x128xbf16>
    %cst_14 = arith.constant dense<0.000000e+00> : vector<8x128xf32>
    %19 = tpu.matmul %17, %18, %cst_14 {dimension_numbers = #tpu.dot_dimension_numbers<[1], [0], [0], [1], [0, 0, 1, 1], [], []>} : vector<8x32xbf16>, vector<32x128xbf16>, vector<8x128xf32> -> vector<8x128xf32>
    %c0_15 = arith.constant 0 : index
    %c0_16 = arith.constant 0 : index
    %20 = vector.load %arg7[%c0_15, %c0_16] : memref<1x128xf32, #tpu.memory_space<vmem>>, vector<1x128xf32>
    %21 = vector.broadcast %20 : vector<1x128xf32> to vector<8x128xf32>
    %22 = arith.addf %19, %21 : vector<8x128xf32>
    %cst_17 = arith.constant dense<0xFF800000> : vector<8xf32>
    %23 = vector.multi_reduction <maximumf>, %22, %cst_17 [1] : vector<8x128xf32> to vector<8xf32>
    %24 = vector.shape_cast %23 : vector<8xf32> to vector<8x1xf32>
    %25 = vector.broadcast %24 : vector<8x1xf32> to vector<8x128xf32>
    %26 = arith.subf %22, %25 : vector<8x128xf32>
    %27 = math.exp %26 : vector<8x128xf32>
    %cst_18 = arith.constant dense<0.000000e+00> : vector<8xf32>
    %28 = vector.multi_reduction <add>, %27, %cst_18 [1] : vector<8x128xf32> to vector<8xf32>
    %29 = vector.shape_cast %28 : vector<8xf32> to vector<8x1xf32>
    %30 = vector.broadcast %29 : vector<8x1xf32> to vector<8x128xf32>
    %31 = arith.divf %27, %30 : vector<8x128xf32>
    %32 = vector.extract_strided_slice %31 {offsets = [0, 0], sizes = [8, 8], strides = [1, 1]} : vector<8x128xf32> to vector<8x8xf32>
    %c0_19 = arith.constant 0 : index
    %c0_20 = arith.constant 0 : index
    %33 = vector.load %arg8[%c0_19, %c0_20] : memref<8x8xf32, #tpu.memory_space<vmem>>, vector<8x8xf32>
    tpu.vector_store %arg8[%c0_19, %c0_20], %32 {strides = array<i32>} : memref<8x8xf32, #tpu.memory_space<vmem>>, vector<8x8xf32>,
    return
  }
  func.func @transform_0(%arg0: i32) -> (i32, i32) {
    %c0_i32 = arith.constant 0 : i32
    %c0_i32_0 = arith.constant 0 : i32
    return %arg0, %c0_i32 : i32, i32
  }
  func.func @transform_1(%arg0: i32) -> (i32, i32) {
    %c0_i32 = arith.constant 0 : i32
    %c0_i32_0 = arith.constant 0 : i32
    %c0_i32_1 = arith.constant 0 : i32
    return %c0_i32, %c0_i32_0 : i32, i32
  }
  func.func @transform_2(%arg0: i32) -> (i32, i32) {
    %c0_i32 = arith.constant 0 : i32
    %c0_i32_0 = arith.constant 0 : i32
    %c0_i32_1 = arith.constant 0 : i32
    return %c0_i32, %c0_i32_0 : i32, i32
  }
  func.func @transform_3(%arg0: i32) -> (i32, i32) {
    %c0_i32 = arith.constant 0 : i32
    %c0_i32_0 = arith.constant 0 : i32
    %c0_i32_1 = arith.constant 0 : i32
    return %c0_i32, %c0_i32_0 : i32, i32
  }
  func.func @transform_4(%arg0: i32) -> (i32, i32) {
    %c0_i32 = arith.constant 0 : i32
    %c0_i32_0 = arith.constant 0 : i32
    %c0_i32_1 = arith.constant 0 : i32
    return %c0_i32, %c0_i32_0 : i32, i32
  }
  func.func @transform_5(%arg0: i32) -> (i32, i32) {
    %c0_i32 = arith.constant 0 : i32
    %c0_i32_0 = arith.constant 0 : i32
    %c0_i32_1 = arith.constant 0 : i32
    return %c0_i32, %c0_i32_0 : i32, i32
  }
  func.func @transform_6(%arg0: i32) -> (i32, i32) {
    %c0_i32 = arith.constant 0 : i32
    %c0_i32_0 = arith.constant 0 : i32
    %c0_i32_1 = arith.constant 0 : i32
    return %c0_i32, %c0_i32_0 : i32, i32
  }
  func.func @transform_7(%arg0: i32) -> (i32, i32) {
    %c0_i32 = arith.constant 0 : i32
    %c0_i32_0 = arith.constant 0 : i32
    return %arg0, %c0_i32 : i32, i32
  }
}

</mosaic_0001>

<bundles_post_ra>
// kernel: policy_network_forward.1
= control target key start
LH: loop header
LB: loop body
LE: loop exit
PB: predicated region body
PF: predicated region fallthrough
CT: control target
= control target key end

     0   :  { %12 = vsyncpa [#allocation3], 0  ;;  %s566_s0 = inlined_call_operand.hbm [shape: f32[4,16], index: 0, kind: input, shape index: {}]   ;;  %s567_s1 = inlined_call_operand.hbm [shape: bf16[16,32], index: 1, kind: input, shape index: {}]   ;;  %s568_s2 = inlined_call_operand.vmem [shape: f32[1,32], index: 2, kind: input, shape index: {}]   ;;  %s569_s3 = inlined_call_operand.hbm [shape: bf16[32,32], index: 3, kind: input, shape index: {}]   ;;  %s570_s4 = inlined_call_operand.vmem [shape: f32[1,32], index: 4, kind: input, shape index: {}]   ;;  %s571_s5 = inlined_call_operand.hbm [shape: bf16[32,128], index: 5, kind: input, shape index: {}]   ;;  %s572_s6 = inlined_call_operand.vmem [shape: f32[1,128], index: 6, kind: input, shape index: {}]   ;;  %s573_s7 = inlined_call_operand.hbm [shape: f32[4,8], index: 7, kind: output, shape index: {}]  }
   0x1   :  { %13 = vsyncpa [#allocation6], 0 }
   0x2   :  { %14 = vsyncpa [#allocation9], 0 }
   0x3   :  { %15 = vsyncpa [#allocation4], 0 }
   0x4   :  { %20 = vsyncadd [#allocation3], 64  ;;  %s478_s24 = smov [#allocation5]   ;;  %s479_s26 = smov [#allocation2]  }
   0x5   :  { %s33_s25 = sshll.u32 %s478_s24, 4  ;;  %s21_s27 = sshll.u32 %s479_s26, 4  ;;  %s34_s25 = int_to_ptr.vmem [resolvable:$true] %s33_s25  ;;  %s22_s27 = int_to_ptr.vmem [resolvable:$true] %s21_s27 }
   0x6   :  { %s378_s28 = scalar_lea.vmem %s34_s25, 128  ;;  %p383_p1 = scmp.lt.s32.totalorder %s34_s25, %s34_s25 }
   0x7   :  { %p379_p0 = scmp.ne.s32.totalorder %s34_s25, %s378_s28  ;;  %p384_p2 = scmp.lt.s32.totalorder %s378_s28, %s378_s28 }
   0x9   :  { %p385_p3 = por %p384_p2, %p383_p1 }
   0xb   :  { %p386_p4 = pnand %p385_p3, %p379_p0 }
   0xd   :  { %389 = shalt.err (!%p386_p4)
}
   0xe   :  { %s480_s29 = smov 64   ;;  %s481_s30 = smov 4  }
   0xf   :  { %39 = dma.hbm_to_vmem [thread:$0]  %s567_s1, 128, %s34_s25, [#allocation6], %s480_s29, %s480_s29, %s481_s30  }
  0x10   :  { %s398_s10 = scalar_lea.vmem %s22_s27, 64  ;;  %s402_s11 = scalar_lea.vmem %s22_s27, 128 }
  0x11   :  { %p399_p5 = scmp.ne.s32.totalorder %s22_s27, %s398_s10  ;;  %p403_p6 = scmp.lt.s32.totalorder %s22_s27, %s22_s27 }
  0x12   :  { %p404_p7 = scmp.lt.s32.totalorder %s402_s11, %s398_s10 }
  0x14   :  { %p405_p8 = por %p404_p7, %p403_p6 }
  0x16   :  { %p406_p9 = pnand %p405_p8, %p399_p5 }
  0x18   :  { %409 = shalt.err (!%p406_p9)
}
  0x19   :  { %27 = dma.hbm_to_vmem [thread:$0]  %s566_s0, 64, %s22_s27, [#allocation3], %s480_s29, %s480_s29, %s481_s30  }
  0x1a   :  { %s482_s14 = smov [#allocation7]   ;;  %s483_s16 = smov [#allocation8]  }
  0x1b   :  { %s47_s15 = sshll.u32 %s482_s14, 4  ;;  %s61_s17 = sshll.u32 %s483_s16, 4  ;;  %s48_s15 = int_to_ptr.vmem [resolvable:$true] %s47_s15  ;;  %s62_s17 = int_to_ptr.vmem [resolvable:$true] %s61_s17 }
  0x1c   :  { %s418_s1 = scalar_lea.vmem %s48_s15, 256  ;;  %p423_p11 = scmp.lt.s32.totalorder %s48_s15, %s48_s15 }
  0x1d   :  { %p419_p10 = scmp.ne.s32.totalorder %s48_s15, %s418_s1  ;;  %p424_p12 = scmp.lt.s32.totalorder %s418_s1, %s418_s1 }
  0x1f   :  { %p425_p13 = por %p424_p12, %p423_p11 }
  0x21   :  { %p426_p0 = pnand %p425_p13, %p419_p10 }
  0x23   :  { %429 = shalt.err (!%p426_p0)
}
  0x24   :  { %53 = dma.hbm_to_vmem [thread:$0]  %s569_s3, 256, %s48_s15, [#allocation6], %s480_s29, %s480_s29, %s481_s30  }
  0x25   :  { %s438_s0 = scalar_lea.vmem %s62_s17, 256  ;;  %p443_p2 = scmp.lt.s32.totalorder %s62_s17, %s62_s17 }
  0x26   :  { %p439_p1 = scmp.ne.s32.totalorder %s62_s17, %s438_s0  ;;  %p444_p3 = scmp.lt.s32.totalorder %s438_s0, %s438_s0 }
  0x28   :  { %p445_p4 = por %p444_p3, %p443_p2 }
  0x2a   :  { %p446_p5 = pnand %p445_p4, %p439_p1 }
  0x2c   :  { %449 = shalt.err (!%p446_p5)
}
  0x2d   :  { %67 = dma.hbm_to_vmem [thread:$0]  %s571_s5, 256, %s62_s17, [#allocation9], %s480_s29, %s480_s29, %s481_s30  }
  0x2e   :  { %470 = dma.done.wait [#allocation3], 128  }
  0x2f   :  { %471 = vsyncadd [#allocation3], 4294967168 }
  0x30   :  { %472 = dma.done.wait [#allocation6], 384  }
  0x31   :  { %473 = vsyncadd [#allocation6], 4294966912 }
  0x32   :  { %474 = dma.done.wait [#allocation9], 256  }
  0x33   :  { %475 = vsyncadd [#allocation9], 4294967040  ;;  %v484_v0 = vmov 0.0   ;;  %vm485_vm0 = vmmov 0   ;;  %v361_v1 = vld [vmem:[#allocation5] sm:$0xff]   ;;  %v83_v2 = vld [vmem:[#allocation2] sm:$0xff] }
  0x34   :  { %330 = vmatprep.subr.bf16.mxu0 %v484_v0  ;;  %332 = vmatprep.mubr.msk.bf16.mxu0 %vm485_vm0, %v484_v0  ;;  %vm100_vm1 = vcmask 130048   ;;  %v84_v3 = vpack.c.bf16 %v83_v2, %v83_v2  ;;  %v362_v4 = vld [vmem:[#allocation7 + $0x8] sm:$0xff]   ;;  %v363_v5 = vld [vmem:[#allocation7] sm:$0xff]   ;;  %v364_v6 = vld [vmem:[#allocation8 + $0x8] sm:$0xff]   ;;  %vm169_vm2 = vcmask 261120   ;;  %vm290_vm3 = vcmask 64512  }
  0x35   :  { %336 = vmatprep.subr.bf16.mxu1 %v484_v0  ;;  %340 = vmatprep.mubr.msk.bf16.mxu1 %vm485_vm0, %v484_v0  ;;  %v311_v7 = vld [vmem:[%s568_s2] ss:$0 sm:$0xff] }
  0x36   :  { %331 = vmatpush3.bf16.msra.mxu0 %v361_v1  ;;  %337 = vmatpush3.bf16.msra.mxu1 %v362_v4  ;;  %v365_v15 = vld [vmem:[#allocation8] sm:$0xff]  }
  0x37   :  { %344 = vmatprep.subr.bf16.mxu0 %v484_v0  ;;  %338 = vmatprep.subr.bf16.mxu1 %v484_v0  ;;  %v314_v16 = vld [vmem:[%s570_s4] ss:$0 sm:$0xff] }
  0x38   :  { %v318_v24 = vld [vmem:[%s572_s6] ss:$0 sm:$0xff] }
  0x39   :  { %333 = vmatmul.mubr.msk.bf16.vlgmr.msra.gmra.mxu0 %vm100_vm1, %v84_v3 }
  0x3a   :  { %348 = vmatprep.mubr.msk.bf16.mxu0 %vm485_vm0, %v484_v0  ;;  %339 = vmatpush3.bf16.msra.mxu1 %v363_v5 }
  0x3b   :  { %345 = vmatpush3.bf16.msra.mxu0 %v364_v6 }
  0x3c   :  { %346 = vmatprep.subr.bf16.mxu0 %v484_v0 }
  0x3f   :  { %347 = vmatpush3.bf16.msra.mxu0 %v365_v15 }
  0xf9   :  { %v138_v8 = vpop.f32.mrf.mxu0 }
  0xfa   :  { %v139_v9 = vadd.f32 %v311_v7, %v138_v8 }
  0xfb   :  { %v334_v10 = vpop.f32.mrf.mxu0 }
  0xfc   :  { %v144_v11 = vmax.f32 %v139_v9, 0.0 }
  0xfd   :  { %v141_v12 = vpop.f32.mrf.mxu0 }
  0xfe   :  { %v145_v13 = vpack.c.bf16 %v144_v11, %v144_v11 }
  0xff   :  { %v335_v14 = vpop.f32.mrf.mxu0 }
 0x100   :  { %341 = vmatmul.mubr.msk.bf16.vlgmr.msra.gmra.mxu1 %vm169_vm2, %v145_v13 }
 0x1c0   :  { %v207_v17 = vpop.f32.mrf.mxu1 }
 0x1c1   :  { %v208_v18 = vadd.f32 %v314_v16, %v207_v17 }
 0x1c2   :  { %v342_v19 = vpop.f32.mrf.mxu1 }
 0x1c3   :  { %v213_v20 = vmax.f32 %v208_v18, 0.0 }
 0x1c4   :  { %v210_v21 = vpop.f32.mrf.mxu1 }
 0x1c5   :  { %v214_v22 = vpack.c.bf16 %v213_v20, %v213_v20 }
 0x1c6   :  { %v343_v23 = vpop.f32.mrf.mxu1 }
 0x1c7   :  { %349 = vmatmul.mubr.msk.bf16.vlgmr.msra.gmra.mxu0 %vm169_vm2, %v214_v22 }
 0x287   :  { %v275_v25 = vpop.f32.mrf.mxu0 }
 0x288   :  { %v276_v26 = vadd.f32 %v318_v24, %v275_v25 }
 0x289   :  { %v350_v27 = vpop.f32.mrf.mxu0 }
 0x28a   :  { %281 = vmax.xlane.f32.xlu0 %v276_v26 }
 0x28b   :  { %v278_v28 = vpop.f32.mrf.mxu0 }
 0x28d   :  { %v351_v29 = vpop.f32.mrf.mxu0 }
 0x313   :  { %v282_v30 = vpop.xlane.xlu0 %281 }
 0x314   :  { %v283_v31 = vsub.f32 %v276_v26, %v282_v30 }
 0x316   :  { %v284_v32 = vmul.f32 1.442695, %v283_v31 }
 0x318   :  { %366 = vpow2.f32 %v284_v32 }
 0x325   :  { %v367_v33 = vpop.eup %366 }
 0x326   :  { %286 = vadd.xlane.f32.xlu0 %v367_v33 }
 0x3af   :  { %v287_v34 = vpop.xlane.xlu0 %286 }
 0x3b0   :  { %368 = vrcp.f32 %v287_v34 }
 0x3bd   :  { %v369_v35 = vpop.eup %368 }
 0x3be   :  { %v289_v36 = vmul.f32 %v369_v35, %v367_v33 }
 0x3c0   :  { %291 = vst.msk [vmem:[#allocation10] sm:$0xff] %vm290_vm3, %v289_v36 }
 0x3c1   :  { %296 = vsyncadd [#allocation4], 64  ;;  %s486_s4 = smov [#allocation10]  }
 0x3c2   :  { %s297_s6 = sshll.u32 %s486_s4, 4  ;;  %s298_s6 = int_to_ptr.vmem [resolvable:$true] %s297_s6 }
 0x3c3   :  { %s450_s25 = scalar_lea.vmem %s298_s6, 64  ;;  %s454_s26 = scalar_lea.vmem %s298_s6, 128 }
 0x3c4   :  { %p451_p6 = scmp.ne.s32.totalorder %s298_s6, %s450_s25  ;;  %p455_p7 = scmp.lt.s32.totalorder %s298_s6, %s298_s6 }
 0x3c5   :  { %p456_p8 = scmp.lt.s32.totalorder %s454_s26, %s450_s25 }
 0x3c7   :  { %p457_p9 = por %p456_p8, %p455_p7 }
 0x3c9   :  { %p458_p10 = pnand %p457_p9, %p451_p6 }
 0x3cb   :  { %461 = shalt.err (!%p458_p10)
}
 0x3cc   :  { %303 = dma.vmem_to_hbm [thread:$0]  %s298_s6, 64, %s573_s7, [#allocation4], %s480_s29, %s480_s29, %s481_s30  }
 0x3cd   :  { %476 = dma.done.wait [#allocation4], 128  }
 0x3ce   :  { %477 = vsyncadd [#allocation4], 4294967168 }
 0x3cf   :  { %307 = vsyncpa [#allocation3], 1 }
 0x3d0   :  { %308 = vsyncpa [#allocation6], 1 }
 0x3d1   :  { %309 = vsyncpa [#allocation9], 1 }
 0x3d2   :  { %310 = vsyncpa [#allocation4], 1 }

</bundles_post_ra>
